<compile_context>
chip_gen: v6e
topology: v6e:2x2x1
jax: 0.10.0
libtpu: 0.0.40
codegen_flags: <defaults>
</compile_context>

<pallas_src>
import functools

import jax
import jax.numpy as jnp
from jax import lax
from jax.experimental import pallas as pl
from jax.experimental.pallas import tpu as pltpu


def _round_up(x, m):
    return ((x + m - 1) // m) * m


def _mlp_kernel(x_ref, w1_ref, b1_ref, w2_ref, b2_ref, o_ref):
    # x : (Tn, F)   w1: (H, F)   b1: (H, 1)   w2: (O, H)   b2: (O, 1)
    # o : (O, Tn)   -- batch lives on the lane axis => lane-dense output store.
    #
    # First layer: contract F (dim 1 of both operands) -> (H, Tn).
    h = lax.dot_general(
        w1_ref[...], x_ref[...],
        dimension_numbers=(((1,), (1,)), ((), ())),
        preferred_element_type=jnp.float32)
    h = jnp.maximum(h + b1_ref[...], 0.0)           # bias broadcasts over lanes
    # Second layer.  The astype is a no-op for f32 weights; if bf16 weights are
    # ever supplied it deliberately downcasts the f32 accumulator before the
    # MXU dot (accumulation stays f32 via preferred_element_type).
    y = jnp.dot(w2_ref[...], h.astype(w2_ref.dtype),
                preferred_element_type=jnp.float32)
    o_ref[...] = (y + b2_ref[...]).astype(o_ref.dtype)


@functools.partial(jax.jit, static_argnames=("block_n",))
def mlp_forward(x, w1, b1, w2, b2, *, block_n=None):
    """Forward pass of Net.

    x : (N, n_feature) activations.
    w1: (n_hidden, n_feature), b1: (n_hidden,) or (n_hidden, 1)   [PyTorch layout]
    w2: (n_output, n_hidden),  b2: (n_output,) or (n_output, 1)   [PyTorch layout]
    Returns (N, n_output).
    """
    n, f = x.shape
    h_dim = w1.shape[0]
    o_dim = w2.shape[0]

    b1 = b1.reshape(h_dim, 1)
    b2 = b2.reshape(o_dim, 1)

    # Batch (N) is tiled along the lane axis of the output.  Big blocks to
    # amortize per-grid-step overhead; >= 2 steps once N spans >1 lane tile so
    # the "parallel" batch axis can shard across v7x's two TensorCores.
    max_block_n = 32768
    n_lane = _round_up(n, 128)
    if block_n is None:
        if n_lane <= 128:
            block_n = 128
        else:
            block_n = min(max_block_n, _round_up((n_lane + 1) // 2, 128))
    block_n = max(128, _round_up(block_n, 128))

    grid = (pl.cdiv(n, block_n),)

    itemsize = jnp.dtype(x.dtype).itemsize
    flops = 2 * n * (f * h_dim + h_dim * o_dim)
    bytes_accessed = itemsize * (
        n * f + h_dim * f + h_dim + o_dim * h_dim + o_dim + o_dim * n)

    yt = pl.pallas_call(
        _mlp_kernel,
        out_shape=jax.ShapeDtypeStruct((o_dim, n), x.dtype),
        grid_spec=pltpu.PrefetchScalarGridSpec(
            num_scalar_prefetch=0,
            grid=grid,
            in_specs=[
                # activations in natural (N, F) layout, tiled along the batch
                pl.BlockSpec((block_n, f), lambda i: (i, 0)),
                # weights / biases: full-extent, resident across the grid
                pl.BlockSpec((h_dim, f), lambda i: (0, 0)),
                pl.BlockSpec((h_dim, 1), lambda i: (0, 0)),
                pl.BlockSpec((o_dim, h_dim), lambda i: (0, 0)),
                pl.BlockSpec((o_dim, 1), lambda i: (0, 0)),
            ],
            out_specs=pl.BlockSpec((o_dim, block_n), lambda i: (0, i)),
        ),
        # Batch blocks are independent; on v7x this axis shards across the two
        # TensorCores once the grid has >1 step.
        compiler_params=pltpu.CompilerParams(
            dimension_semantics=("parallel",)),
        cost_estimate=pl.CostEstimate(
            flops=flops, transcendentals=0, bytes_accessed=bytes_accessed),
    )(x, w1, b1, w2, b2)

    return yt.T                                      # (N, n_output)


def init_params(key, n_feature, n_hidden, n_output):
    """torch.nn.Linear-style init (uniform +/- 1/sqrt(fan_in)), native (out, in)
    weight layout."""
    k1, k2, k3, k4 = jax.random.split(key, 4)
    bound1 = 1.0 / jnp.sqrt(jnp.float32(n_feature))
    bound2 = 1.0 / jnp.sqrt(jnp.float32(n_hidden))
    w1 = jax.random.uniform(k1, (n_hidden, n_feature), jnp.float32, -bound1, bound1)
    b1 = jax.random.uniform(k2, (n_hidden, 1), jnp.float32, -bound1, bound1)
    w2 = jax.random.uniform(k3, (n_output, n_hidden), jnp.float32, -bound2, bound2)
    b2 = jax.random.uniform(k4, (n_output, 1), jnp.float32, -bound2, bound2)
    return w1, b1, w2, b2


if __name__ == "__main__":
    # Module-implied shapes: x (N, n_feature) -> (N, n_output).
    # N=100 (like the spec's linspace example) exercises the ragged-block path.
    N, n_feature, n_hidden, n_output = 100, 4, 32, 1

    key = jax.random.PRNGKey(0)
    kx, kp = jax.random.split(key)
    x = jax.random.normal(kx, (N, n_feature), dtype=jnp.float32)
    w1, b1, w2, b2 = init_params(kp, n_feature, n_hidden, n_output)

    out = mlp_forward(x, w1, b1, w2, b2)
    out = jax.block_until_ready(out)

    # Pure-JAX reference (same math, row-major layout).
    ref = jnp.maximum(x @ w1.T + b1.reshape(1, -1), 0.0) @ w2.T + b2.reshape(1, -1)
    assert out.shape == (N, n_output)
    assert jnp.allclose(out, ref, atol=1e-5, rtol=1e-5)

    print("KERNEL_OK")
</pallas_src>

<mosaic_0001>
module attributes {stable_mosaic.version = 11 : i64} {
  func.func @_mlp_kernel(%arg0: i32, %arg1: memref<128x4xf32, #tpu.memory_space<vmem>>, %arg2: memref<32x4xf32, #tpu.memory_space<vmem>>, %arg3: memref<32x1xf32, #tpu.memory_space<vmem>>, %arg4: memref<1x32xf32, #tpu.memory_space<vmem>>, %arg5: memref<1x1xf32, #tpu.memory_space<vmem>>, %arg6: memref<1x128xf32, #tpu.memory_space<vmem>>) attributes {dimension_semantics = [#tpu.dimension_semantics<parallel>], iteration_bounds = array<i64: 1>, scalar_prefetch = 0 : i64, scratch_operands = 0 : i64, tpu.core_type = #tpu.core_type<tc>, window_params = [{transform_indices = @transform_0, window_bounds = array<i64: 128, 4>}, {pipeline_mode = #tpu.pipeline_mode<synchronous>, transform_indices = @transform_1, window_bounds = array<i64: 32, 4>}, {pipeline_mode = #tpu.pipeline_mode<synchronous>, transform_indices = @transform_2, window_bounds = array<i64: 32, 1>}, {pipeline_mode = #tpu.pipeline_mode<synchronous>, transform_indices = @transform_3, window_bounds = array<i64: 1, 32>}, {pipeline_mode = #tpu.pipeline_mode<synchronous>, transform_indices = @transform_4, window_bounds = array<i64: 1, 1>}, {transform_indices = @transform_5, window_bounds = array<i64: 1, 128>}]} {
    %c0 = arith.constant 0 : index
    %c0_0 = arith.constant 0 : index
    %0 = vector.load %arg2[%c0, %c0_0] : memref<32x4xf32, #tpu.memory_space<vmem>>, vector<32x4xf32>
    %c0_1 = arith.constant 0 : index
    %c0_2 = arith.constant 0 : index
    %1 = vector.load %arg1[%c0_1, %c0_2] : memref<128x4xf32, #tpu.memory_space<vmem>>, vector<128x4xf32>
    %cst = arith.constant dense<0.000000e+00> : vector<32x128xf32>
    %2 = tpu.matmul %0, %1, %cst {dimension_numbers = #tpu.dot_dimension_numbers<[1], [1], [0], [0], [0, 0, 1, 0], [], []>} : vector<32x4xf32>, vector<128x4xf32>, vector<32x128xf32> -> vector<32x128xf32>
    %c0_3 = arith.constant 0 : index
    %c0_4 = arith.constant 0 : index
    %3 = vector.load %arg3[%c0_3, %c0_4] : memref<32x1xf32, #tpu.memory_space<vmem>>, vector<32x1xf32>
    %4 = vector.broadcast %3 : vector<32x1xf32> to vector<32x128xf32>
    %5 = arith.addf %2, %4 : vector<32x128xf32>
    %cst_5 = arith.constant 0.000000e+00 : f32
    %6 = vector.broadcast %cst_5 : f32 to vector<32x128xf32>
    %7 = arith.maximumf %5, %6 : vector<32x128xf32>
    %c0_6 = arith.constant 0 : index
    %c0_7 = arith.constant 0 : index
    %8 = vector.load %arg4[%c0_6, %c0_7] : memref<1x32xf32, #tpu.memory_space<vmem>>, vector<1x32xf32>
    %cst_8 = arith.constant dense<0.000000e+00> : vector<1x128xf32>
    %9 = tpu.matmul %8, %7, %cst_8 {dimension_numbers = #tpu.dot_dimension_numbers<[1], [0], [0], [1], [0, 0, 1, 1], [], []>} : vector<1x32xf32>, vector<32x128xf32>, vector<1x128xf32> -> vector<1x128xf32>
    %c0_9 = arith.constant 0 : index
    %c0_10 = arith.constant 0 : index
    %10 = vector.load %arg5[%c0_9, %c0_10] : memref<1x1xf32, #tpu.memory_space<vmem>>, vector<1x1xf32>
    %11 = vector.broadcast %10 : vector<1x1xf32> to vector<1x128xf32>
    %12 = arith.addf %9, %11 : vector<1x128xf32>
    %c0_11 = arith.constant 0 : index
    %c0_12 = arith.constant 0 : index
    %13 = vector.load %arg6[%c0_11, %c0_12] : memref<1x128xf32, #tpu.memory_space<vmem>>, vector<1x128xf32>
    tpu.vector_store %arg6[%c0_11, %c0_12], %12 {strides = array<i32>} : memref<1x128xf32, #tpu.memory_space<vmem>>, vector<1x128xf32>,
    return
  }
  func.func @transform_0(%arg0: i32) -> (i32, i32) {
    %c0_i32 = arith.constant 0 : i32
    %c0_i32_0 = arith.constant 0 : i32
    return %arg0, %c0_i32 : i32, i32
  }
  func.func @transform_1(%arg0: i32) -> (i32, i32) {
    %c0_i32 = arith.constant 0 : i32
    %c0_i32_0 = arith.constant 0 : i32
    %c0_i32_1 = arith.constant 0 : i32
    return %c0_i32, %c0_i32_0 : i32, i32
  }
  func.func @transform_2(%arg0: i32) -> (i32, i32) {
    %c0_i32 = arith.constant 0 : i32
    %c0_i32_0 = arith.constant 0 : i32
    %c0_i32_1 = arith.constant 0 : i32
    return %c0_i32, %c0_i32_0 : i32, i32
  }
  func.func @transform_3(%arg0: i32) -> (i32, i32) {
    %c0_i32 = arith.constant 0 : i32
    %c0_i32_0 = arith.constant 0 : i32
    %c0_i32_1 = arith.constant 0 : i32
    return %c0_i32, %c0_i32_0 : i32, i32
  }
  func.func @transform_4(%arg0: i32) -> (i32, i32) {
    %c0_i32 = arith.constant 0 : i32
    %c0_i32_0 = arith.constant 0 : i32
    %c0_i32_1 = arith.constant 0 : i32
    return %c0_i32, %c0_i32_0 : i32, i32
  }
  func.func @transform_5(%arg0: i32) -> (i32, i32) {
    %c0_i32 = arith.constant 0 : i32
    %c0_i32_0 = arith.constant 0 : i32
    return %c0_i32, %arg0 : i32, i32
  }
}

</mosaic_0001>

<bundles_post_ra>
// kernel: mlp_forward.1
= control target key start
LH: loop header
LB: loop body
LE: loop exit
PB: predicated region body
PF: predicated region fallthrough
CT: control target
= control target key end

     0   :  { %s591_s0 = inlined_call_operand.vmem [shape: f32[100,4], index: 0, kind: input, shape index: {}]   ;;  %s592_s1 = inlined_call_operand.vmem [shape: f32[32,4], index: 1, kind: input, shape index: {}]   ;;  %s593_s2 = inlined_call_operand.vmem [shape: f32[32,1], index: 2, kind: input, shape index: {}]   ;;  %s594_s3 = inlined_call_operand.vmem [shape: f32[1,32], index: 3, kind: input, shape index: {}]   ;;  %s595_s4 = inlined_call_operand.<no memory space> [shape: f32[1,1], index: 4, kind: input, shape index: {}]   ;;  %s596_s5 = inlined_call_operand.hbm [shape: f32[1,100], index: 5, kind: output, shape index: {}]  }
   0x1   :  { %v10_v0 = vstv %s595_s4 }
   0x2   :  { %11 = vst [vmem:[#allocation2] sm:$0x1] %v10_v0 }
   0x3   :  { %v42_v1 = vld [vmem:[%s591_s0 + $0x78] sm:$0xff]  ;;  %vm67_vm0 = vcmask 31744   ;;  %v41_v2 = vld [vmem:[%s591_s0 + $0x70] sm:$0xff]  ;;  %v440_v3 = vmov 0   ;;  %v40_v4 = vld [vmem:[%s591_s0 + $0x68] sm:$0xff] }
   0x4   :  { %363 = vmatprep.subr.msk.mxu0 %vm67_vm0, %v42_v1  ;;  %416 = vset.pattern.permute.xlu0 %v440_v3  ;;  %v23_v5 = vld [vmem:[%s592_s1] sm:$0xff]  ;;  %v46_v6 = vld [vmem:[%s593_s2 + $0x18] sm:$0xff]  ;;  %v44_v7 = vld [vmem:[%s593_s2 + $0x8] sm:$0xff] }
   0x5   :  { %364 = vmatpush3.xpose.msk.msra.mxu0 %vm67_vm0, %v42_v1  ;;  %417 = vset.pattern.permute.xlu1 %v440_v3  ;;  %v39_v8 = vld [vmem:[%s591_s0 + $0x60] sm:$0xff]  ;;  %v45_v9 = vld [vmem:[%s593_s2 + $0x10] sm:$0xff] }
   0x6   :  { %365 = vmatprep.subr.msk.mxu0 %vm67_vm0, %v41_v2  ;;  %395 = vmatprep.mubr.msk.f32.mxu0 %vm67_vm0, %v23_v5 }
   0x7   :  { %64 = vperm.xlu0 %416, %v46_v6   ;;  %54 = vperm.xlu1 %417, %v44_v7  }
   0x9   :  { %366 = vmatpush3.xpose.msk.msra.mxu0 %vm67_vm0, %v41_v2 }
   0xa   :  { %367 = vmatprep.subr.msk.mxu0 %vm67_vm0, %v40_v4 }
   0xb   :  { %12 = vsyncpa [#allocation4], 0  ;;  %v43_v10 = vld [vmem:[%s593_s2] sm:$0xff]  ;;  %59 = vperm.xlu0 %416, %v45_v9   ;;  %v38_v11 = vld [vmem:[%s591_s0 + $0x58] sm:$0xff]  ;;  %v441_v27 = vmov 0.0   ;;  %vm442_vm1 = vmmov 0   ;;  %v224_v45 = vlaneseq }
   0xc   :  { %v218_v12 = vld [vmem:[#allocation2] sm:$0x1]  ;;  %49 = vperm.xlu1 %417, %v43_v10   ;;  %v37_v13 = vld [vmem:[%s591_s0 + $0x50] sm:$0xff]  ;;  %v36_v14 = vld [vmem:[%s591_s0 + $0x48] sm:$0xff]  ;;  %401 = vmatprep.subr.mxu1 %v441_v27  ;;  %vm228_vm2 = vcmask 261120   ;;  %s443_s15 = smov [#allocation3]  }
   0xd   :  { %368 = vmatpush3.xpose.msk.msra.mxu0 %vm67_vm0, %v40_v4  ;;  %v35_v15 = vld [vmem:[%s591_s0 + $0x40] sm:$0xff]  ;;  %v34_v16 = vld [vmem:[%s591_s0 + $0x38] sm:$0xff]  ;;  %v33_v17 = vld [vmem:[%s591_s0 + $0x30] sm:$0xff]  ;;  %409 = vmatprep.mubr.msk.f32.mxu1 %vm442_vm1, %v441_v27  ;;  %v225_v46 = vshrl.u32 %v224_v45, 7  ;;  %s309_s2 = sshll.u32 %s443_s15, 4  ;;  %s310_s2 = int_to_ptr.vmem [resolvable:$true] %s309_s2 }
   0xe   :  { %369 = vmatprep.subr.msk.mxu0 %vm67_vm0, %v39_v8  ;;  %v32_v18 = vld [vmem:[%s591_s0 + $0x28] sm:$0xff]  ;;  %v31_v19 = vld [vmem:[%s591_s0 + $0x20] sm:$0xff]  ;;  %v30_v20 = vld [vmem:[%s591_s0 + $0x18] sm:$0xff]  ;;  %s418_s16 = scalar_lea.vmem %s310_s2, 16  ;;  %s422_s17 = scalar_lea.vmem %s310_s2, 32 }
   0xf   :  { %221 = vperm.xlu0 %416, %v218_v12   ;;  %v29_v21 = vld [vmem:[%s591_s0 + $0x10] sm:$0xff]  ;;  %v28_v22 = vld [vmem:[%s591_s0 + $0x8] sm:$0xff]  ;;  %v27_v23 = vld [vmem:[%s591_s0] sm:$0xff]  ;;  %v226_v47 = vsub.s32 0, %v225_v46  ;;  %p419_p0 = scmp.ne.s32.totalorder %s310_s2, %s418_s16  ;;  %p423_p1 = scmp.lt.s32.totalorder %s310_s2, %s310_s2 }
  0x10   :  { %v24_v24 = vld [vmem:[%s592_s1 + $0x8] sm:$0xff]  ;;  %v25_v25 = vld [vmem:[%s592_s1 + $0x10] sm:$0xff]  ;;  %v26_v26 = vld [vmem:[%s592_s1 + $0x18] sm:$0xff]  ;;  %p424_p2 = scmp.lt.s32.totalorder %s422_s17, %s418_s16 }
  0x11   :  { %370 = vmatpush3.xpose.msk.msra.mxu0 %vm67_vm0, %v39_v8  ;;  %v217_v44 = vld [vmem:[%s594_s3] sm:$0x1] }
  0x12   :  { %371 = vmatprep.subr.msk.mxu0 %vm67_vm0, %v38_v11  ;;  %p425_p3 = por %p424_p2, %p423_p1 }
  0x14   :  { %p426_p4 = pnand %p425_p3, %p419_p0 }
  0x15   :  { %372 = vmatpush3.xpose.msk.msra.mxu0 %vm67_vm0, %v38_v11 }
  0x16   :  { %373 = vmatprep.subr.msk.mxu0 %vm67_vm0, %v37_v13 }
  0x19   :  { %374 = vmatpush3.xpose.msk.msra.mxu0 %vm67_vm0, %v37_v13 }
  0x1a   :  { %375 = vmatprep.subr.msk.mxu0 %vm67_vm0, %v36_v14 }
  0x1d   :  { %376 = vmatpush3.xpose.msk.msra.mxu0 %vm67_vm0, %v36_v14 }
  0x1e   :  { %377 = vmatprep.subr.msk.mxu0 %vm67_vm0, %v35_v15 }
  0x21   :  { %378 = vmatpush3.xpose.msk.msra.mxu0 %vm67_vm0, %v35_v15 }
  0x22   :  { %379 = vmatprep.subr.msk.mxu0 %vm67_vm0, %v34_v16 }
  0x25   :  { %380 = vmatpush3.xpose.msk.msra.mxu0 %vm67_vm0, %v34_v16 }
  0x26   :  { %381 = vmatprep.subr.msk.mxu0 %vm67_vm0, %v33_v17 }
  0x29   :  { %382 = vmatpush3.xpose.msk.msra.mxu0 %vm67_vm0, %v33_v17 }
  0x2a   :  { %383 = vmatprep.subr.msk.mxu0 %vm67_vm0, %v32_v18 }
  0x2d   :  { %384 = vmatpush3.xpose.msk.msra.mxu0 %vm67_vm0, %v32_v18 }
  0x2e   :  { %385 = vmatprep.subr.msk.mxu0 %vm67_vm0, %v31_v19 }
  0x31   :  { %386 = vmatpush3.xpose.msk.msra.mxu0 %vm67_vm0, %v31_v19 }
  0x32   :  { %387 = vmatprep.subr.msk.mxu0 %vm67_vm0, %v30_v20 }
  0x35   :  { %388 = vmatpush3.xpose.msk.msra.mxu0 %vm67_vm0, %v30_v20 }
  0x36   :  { %389 = vmatprep.subr.msk.mxu0 %vm67_vm0, %v29_v21 }
  0x39   :  { %390 = vmatpush3.xpose.msk.msra.mxu0 %vm67_vm0, %v29_v21 }
  0x3a   :  { %391 = vmatprep.subr.msk.mxu0 %vm67_vm0, %v28_v22 }
  0x3d   :  { %392 = vmatpush3.xpose.msk.msra.mxu0 %vm67_vm0, %v28_v22 }
  0x3e   :  { %393 = vmatprep.subr.msk.mxu0 %vm67_vm0, %v27_v23 }
  0x41   :  { %394 = vmatpush3.xpose.msk.msra.mxu0 %vm67_vm0, %v27_v23 }
  0x44   :  { %396 = vmatmul.mubr.msk.f32.vlgmr.msra.gmra.mxu0 %vm67_vm0, %v24_v24 }
  0x45   :  { %398 = vmatprep.mubr.msk.f32.mxu0 %vm67_vm0, %v25_v25 }
  0x48   :  { %399 = vmatmul.mubr.msk.f32.gmra.mxu0 %vm67_vm0, %v26_v26 }
  0x82   :  { %v65_v28 = vpop.permute.xlu0 %64  ;;  %v55_v29 = vpop.permute.xlu1 %54 }
  0x86   :  { %v60_v33 = vpop.permute.xlu0 %59 }
  0x87   :  { %v50_v35 = vpop.permute.xlu1 %49 }
  0x8a   :  { %v222_v48 = vpop.permute.xlu0 %221 }
  0x8b   :  { %v227_v49 = vrot.slane %v222_v48, %v226_v47 }
 0x104   :  { %v397_v30 = vpop.f32.mrf.mxu0 }
 0x105   :  { %v200_v37 = vadd.f32 %v397_v30, %v55_v29 }
 0x106   :  { %v194_v31 = vpop.f32.mrf.mxu0 }
 0x107   :  { %v195_v40 = vadd.f32 %v194_v31, %v50_v35  ;;  %v214_v42 = vmax.f32 %v200_v37, 0.0 }
 0x108   :  { %v400_v32 = vpop.f32.mrf.mxu0 }
 0x109   :  { %v210_v34 = vadd.f32 %v400_v32, %v65_v28  ;;  %v213_v43 = vmax.f32 %v195_v40, 0.0 }
 0x10a   :  { %v204_v36 = vpop.f32.mrf.mxu0 }
 0x10b   :  { %v216_v38 = vmax.f32 %v210_v34, 0.0  ;;  %v205_v39 = vadd.f32 %v204_v36, %v60_v33 }
 0x10d   :  { %v215_v41 = vmax.f32 %v205_v39, 0.0  ;;  %402 = vmatpush3.msra.mxu1 %v216_v38 }
 0x10e   :  { %403 = vmatprep.subr.mxu1 %v441_v27 }
 0x10f   :  { %404 = vmatpush3.msra.mxu1 %v215_v41 }
 0x110   :  { %405 = vmatprep.subr.mxu1 %v441_v27 }
 0x111   :  { %406 = vmatpush3.msra.mxu1 %v214_v42 }
 0x112   :  { %407 = vmatprep.subr.mxu1 %v441_v27 }
 0x113   :  { %408 = vmatpush3.msra.mxu1 %v213_v43 }
 0x114   :  { %410 = vmatmul.mubr.msk.f32.vlgmr.msra.gmra.mxu1 %vm228_vm2, %v217_v44 }
 0x1d4   :  { %v298_v50 = vpop.f32.mrf.mxu1 }
 0x1d5   :  { %v299_v51 = vadd.f32 %v298_v50, %v227_v49 }
 0x1d6   :  { %v411_v52 = vpop.f32.mrf.mxu1 }
 0x1d7   :  { %302 = vst [vmem:[#allocation3] sm:$0x1] %v299_v51 }
 0x1d8   :  { %429 = shalt.err (!%p426_p4)
}
 0x1d9   :  { %312 = dma.vmem_to_hbm [thread:$0]  %s310_s2, 16, %s596_s5, [#allocation4]  }
 0x1da   :  { %438 = dma.done.wait [#allocation4], 16  }
 0x1db   :  { %439 = vsyncadd [#allocation4], 4294967280 }
 0x1dc   :  { %316 = vsyncpa [#allocation4], 1 }

</bundles_post_ra>
